<compile_context>
chip_gen: v7x
topology: tpu7x:2x2x1
jax: 0.10.0
libtpu: 0.0.40
codegen_flags: <defaults>
</compile_context>

<pallas_src>
import functools
import math

import jax
import jax.numpy as jnp
from jax import lax
from jax.experimental import pallas as pl
from jax.experimental.pallas import tpu as pltpu

_EPS = 1e-8            # torch.nn.CosineSimilarity default eps
_EPS2 = _EPS * _EPS    # ATen clamps the product of squared norms at eps^2


def _vmem_sizes():
    """(tile byte budget, vmem_limit_bytes) sized to this TPU generation."""
    try:
        cap = int(pltpu.get_tpu_info().vmem_capacity_bytes)  # 128 MiB v5e/v6e, 64 MiB v7x
    except Exception:
        cap = 64 * 1024 * 1024  # conservative default (v7x per-TensorCore VMEM)
    # 0.60 of capacity for our tiles leaves headroom for Mosaic internal
    # scratch / compiler temporaries (matters most on v7x's 64 MiB).
    return int(cap * 0.60), int(cap * 0.85)


def _round_down_mult(x, m):
    return max(m, (x // m) * m)


# ---------------------------------------------------------------------------
# Prologue: per-row clamped inverse norms (optionally scaled by 1/temp)
# ---------------------------------------------------------------------------
def _inv_norm_kernel(x_ref, o_ref, *, scale):
    x = x_ref[...].astype(jnp.float32)
    n2 = jnp.sum(x * x, axis=-1, keepdims=True)
    # 1 / max(||v||, eps); clamp at the squared-norm level, rsqrt on the EUP.
    o_ref[...] = (lax.rsqrt(jnp.maximum(n2, _EPS2)) * scale).astype(o_ref.dtype)


def _row_inv_norms(rows, scale):
    m, h = rows.shape
    budget, vmem_limit = _vmem_sizes()
    it = jnp.dtype(rows.dtype).itemsize
    per_row = 2 * h * it + 8                      # double-buffered input + output
    rt = min(_round_down_mult(budget // max(per_row, 16), 8), 16384)
    if rt >= m:
        rt = m                                    # full dim: no (8,128) constraint
    return pl.pallas_call(
        functools.partial(_inv_norm_kernel, scale=scale),
        out_shape=jax.ShapeDtypeStruct((m, 1), jnp.float32),
        grid_spec=pltpu.PrefetchScalarGridSpec(
            num_scalar_prefetch=0,
            grid=(pl.cdiv(m, rt),),
            in_specs=[pl.BlockSpec((rt, h), lambda i: (i, 0))],
            out_specs=pl.BlockSpec((rt, 1), lambda i: (i, 0)),
        ),
        compiler_params=pltpu.CompilerParams(
            dimension_semantics=("parallel",),
            vmem_limit_bytes=vmem_limit,
        ),
    )(rows)


# ---------------------------------------------------------------------------
# Path 1: outer-product (SimCSE) cosine similarity on the MXU
# ---------------------------------------------------------------------------
def _outer_cos_kernel(x_ref, y_ref, inx_ref, iny_ref, o_ref, *,
                      h_total, tk, nk, mask_k):
    # x_ref: (tm, tk), y_ref: (tn, tk), inx_ref: (tm, 1), iny_ref: (1, tn),
    # o_ref: (tm, tn) f32 (resident across the k reduction axis).
    x = x_ref[...]
    y = y_ref[...]

    if mask_k:
        # Last K block may run past H: zero the invalid columns so garbage
        # (possibly NaN) memory never reaches the MXU.
        valid = h_total - pl.program_id(2) * tk
        x = jnp.where(lax.broadcasted_iota(jnp.int32, x.shape, 1) < valid, x, 0)
        y = jnp.where(lax.broadcasted_iota(jnp.int32, y.shape, 1) < valid, y, 0)

    # Single-pass native bf16 MXU matmul with f32 accumulation (no multi-pass
    # f32 emulation); norms are NOT recomputed here (no XLU work in the loop).
    part = lax.dot_general(
        x.astype(jnp.bfloat16), y.astype(jnp.bfloat16),
        (((1,), (1,)), ((), ())),
        preferred_element_type=jnp.float32,
    )

    if nk == 1:
        # Common case: no K-tiling -> scale the output tile once and store.
        o_ref[...] = part * (inx_ref[...] * iny_ref[...])
    else:
        k = pl.program_id(2)

        @pl.when(k == 0)
        def _():
            o_ref[...] = jnp.zeros_like(o_ref)

        o_ref[...] += part

        @pl.when(k == nk - 1)
        def _():
            # Finalize once per (i, j): (tm,1) * (1,tn) outer scale in f32.
            o_ref[...] = o_ref[...] * (inx_ref[...] * iny_ref[...])


def _similarity_outer(x_rows, y_rows, inv_temp):
    m, h = x_rows.shape
    n = y_rows.shape[0]
    budget, vmem_limit = _vmem_sizes()
    isx = jnp.dtype(x_rows.dtype).itemsize
    isy = jnp.dtype(y_rows.dtype).itemsize

    # Hoisted out of the (i, j, k) hot loop: clamped inverse row norms in f32,
    # 1/temp folded into the x scales.
    # TODO(synk): per-row clamping differs from ATen's product clamp only for
    # near-zero-norm rows.
    inv_nx = _row_inv_norms(x_rows, inv_temp)              # (m, 1)
    inv_ny = _row_inv_norms(y_rows, 1.0).reshape(1, n)     # (1, n)

    # MXU-friendly output tiles; tn stays a multiple of 256 (v6e/v7x MXUs are
    # 2x256^2).  Partial edge tiles along m/n are masked by Pallas.
    tm = m if m <= 512 else 512
    tn = n if n <= 512 else 512

    # K (hidden-dim) tile from the per-generation VMEM budget, so large H never
    # exceeds per-step VMEM (v7x: 64 MiB) while tm/tn stay MXU-sized.
    fixed = 2 * tm * tn * 4 + 4 * (tm + tn) * 4            # out blocks + scale vecs
    per_k = 2 * (tm * isx + tn * isy)                      # double-buffered x/y cols
    tk_fit = max((budget - fixed) // per_k, 128)
    tk = h if tk_fit >= h else _round_down_mult(tk_fit, 128)
    nk = pl.cdiv(h, tk)
    mask_k = (h % tk) != 0

    grid = (pl.cdiv(m, tm), pl.cdiv(n, tn), nk)            # k innermost (reduction)

    return pl.pallas_call(
        functools.partial(_outer_cos_kernel, h_total=h, tk=tk, nk=nk, mask_k=mask_k),
        out_shape=jax.ShapeDtypeStruct((m, n), jnp.float32),
        grid_spec=pltpu.PrefetchScalarGridSpec(
            num_scalar_prefetch=0,
            grid=grid,
            in_specs=[
                pl.BlockSpec((tm, tk), lambda i, j, k: (i, k)),
                pl.BlockSpec((tn, tk), lambda i, j, k: (j, k)),
                pl.BlockSpec((tm, 1), lambda i, j, k: (i, 0)),
                pl.BlockSpec((1, tn), lambda i, j, k: (0, j)),
            ],
            out_specs=pl.BlockSpec((tm, tn), lambda i, j, k: (i, j)),
        ),
        compiler_params=pltpu.CompilerParams(
            # Shard the i (x-row) axis across TensorCores; j/k stay local so
            # x-tile residency and the output accumulator are preserved.
            dimension_semantics=("parallel", "arbitrary", "arbitrary"),
            vmem_limit_bytes=vmem_limit,
        ),
    )(x_rows, y_rows, inv_nx, inv_ny)


# ---------------------------------------------------------------------------
# Path 2: general row-wise cosine similarity (VPU), lane-dense output
# ---------------------------------------------------------------------------
def _cosine_rows_kernel(x_ref, y_ref, o_ref, *, inv_temp):
    # x_ref / y_ref: (row_tile or 1, H); o_ref: (1, 1, row_tile) lane-dense.
    x = x_ref[...].astype(jnp.float32)
    y = y_ref[...].astype(jnp.float32)
    dot = jnp.sum(x * y, axis=-1)
    nx2 = jnp.sum(x * x, axis=-1)
    ny2 = jnp.sum(y * y, axis=-1)
    # ATen cosine_similarity: w12 * rsqrt(clamp_min(w1 * w2, eps^2)).
    inv = lax.rsqrt(jnp.maximum(nx2 * ny2, _EPS2))
    res = dot * inv * inv_temp
    o_ref[...] = res.reshape(o_ref.shape).astype(o_ref.dtype)


def _similarity_rows(x2, y2, m, h, inv_temp, row_tile=None):
    budget, vmem_limit = _vmem_sizes()

    if row_tile is None:
        per_row = 8                                   # double-buffered f32 output
        if x2.shape[0] == m:
            per_row += 2 * h * jnp.dtype(x2.dtype).itemsize
        if y2.shape[0] == m:
            per_row += 2 * h * jnp.dtype(y2.dtype).itemsize
        # Keep the lane-dense output tile a multiple of 128 (unmasked vst).
        row_tile = min(_round_down_mult(budget // max(per_row, 16), 128), 16384)
    if row_tile >= m:
        row_tile = m                                  # block == full array dims
    else:
        row_tile = max(8, (row_tile // 8) * 8)        # sublane-aligned when tiled

    grid_m = pl.cdiv(m, row_tile)

    def _in_spec(rows):
        if rows.shape[0] == m:
            return pl.BlockSpec((row_tile, h), lambda i: (i, 0))
        # Broadcast operand: a single (1, H) row kept resident via block index
        # 0 — never materialized at the broadcast shape in HBM.
        return pl.BlockSpec((1, h), lambda i: (0, 0))

    out = pl.pallas_call(
        functools.partial(_cosine_rows_kernel, inv_temp=inv_temp),
        out_shape=jax.ShapeDtypeStruct((grid_m, 1, row_tile), jnp.float32),
        grid_spec=pltpu.PrefetchScalarGridSpec(
            num_scalar_prefetch=0,
            grid=(grid_m,),
            in_specs=[_in_spec(x2), _in_spec(y2)],
            # Lane-dense output slab instead of a (row_tile, 1) column of
            # masked partial stores.
            out_specs=pl.BlockSpec((1, 1, row_tile), lambda i: (i, 0, 0)),
        ),
        compiler_params=pltpu.CompilerParams(
            dimension_semantics=("parallel",),
            vmem_limit_bytes=vmem_limit,
        ),
    )(x2, y2)
    return out.reshape(-1)[:m]


# ---------------------------------------------------------------------------
# Public wrapper: Similarity.forward(x, y) == cos(x, y, dim=-1) / temp
# ---------------------------------------------------------------------------
def similarity(x, y, temp=1.0, *, row_tile=None):
    if temp is None:
        temp = 1.0
    inv_temp = 1.0 / float(temp)

    x = jnp.asarray(x)
    y = jnp.asarray(y)

    # SimCSE-style outer product: x (B,1,H) vs y (1,B',H) -> (B,B').
    if (x.ndim == 3 and y.ndim == 3 and x.shape[1] == 1 and y.shape[0] == 1
            and x.shape[-1] == y.shape[-1]):
        b, _, h = x.shape
        n = y.shape[1]
        return _similarity_outer(x.reshape(b, h), y.reshape(n, h), inv_temp)

    # General case: row-wise cosine over the broadcast shape.
    bshape = jnp.broadcast_shapes(x.shape, y.shape)
    h = bshape[-1]
    lead = bshape[:-1]
    m = math.prod(lead) if lead else 1

    def as_rows(a):
        if a.shape == bshape:
            return a.reshape(m, h)
        if a.shape[-1] == h and all(int(d) == 1 for d in a.shape[:-1]):
            return a.reshape(1, h)    # broadcast via index_map, not in HBM
        # TODO(synk): other broadcast patterns (e.g. (B,1,H) vs (B,B',H)) are
        # still materialized in HBM before the row-wise kernel.
        return jnp.broadcast_to(a, bshape).reshape(m, h)

    vals = _similarity_rows(as_rows(x), as_rows(y), m, h, inv_temp,
                            row_tile=row_tile)
    return vals.reshape(lead)


if __name__ == "__main__":
    key = jax.random.PRNGKey(0)
    kx, ky, ka, kb, kc, kd = jax.random.split(key, 6)

    # 1) SimCSE usage: (B,1,H) x (1,B,H) -> (B,B) similarity matrix (MXU path).
    B, H = 8, 32
    temp = 0.05
    x = jax.random.normal(kx, (B, 1, H), dtype=jnp.float32)
    y = jax.random.normal(ky, (1, B, H), dtype=jnp.float32)
    out = jax.block_until_ready(similarity(x, y, temp=temp))

    xb = jnp.broadcast_to(x, (B, B, H))
    yb = jnp.broadcast_to(y, (B, B, H))
    ref = (jnp.sum(xb * yb, axis=-1)
           / jnp.maximum(jnp.linalg.norm(xb, axis=-1)
                         * jnp.linalg.norm(yb, axis=-1), _EPS)) / temp
    assert out.shape == (B, B)
    # bf16-MXU class accuracy (single-pass matmul, f32 accumulation).
    assert jnp.allclose(out, ref, atol=5e-2, rtol=2e-2)

    # 2) Same-shape usage (row-wise path; row_tile=8 forces a partial tail tile
    #    and a multi-step grid at this tiny demo size).
    a = jax.random.normal(ka, (3, 7, 33), dtype=jnp.float32)
    b = jax.random.normal(kb, (3, 7, 33), dtype=jnp.float32)
    out2 = jax.block_until_ready(similarity(a, b, temp=None, row_tile=8))
    ref2 = (jnp.sum(a * b, axis=-1)
            / jnp.maximum(jnp.linalg.norm(a, axis=-1)
                          * jnp.linalg.norm(b, axis=-1), _EPS))
    assert out2.shape == (3, 7)
    assert jnp.allclose(out2, ref2, atol=1e-4, rtol=1e-4)

    # 3) Single-vector broadcast handled through the BlockSpec index_map
    #    (no HBM materialization of the broadcast operand).
    c = jax.random.normal(kc, (4, 5, 16), dtype=jnp.float32)
    d = jax.random.normal(kd, (16,), dtype=jnp.float32)
    out3 = jax.block_until_ready(similarity(c, d, temp=0.1, row_tile=8))
    ref3 = (jnp.sum(c * d, axis=-1)
            / jnp.maximum(jnp.linalg.norm(c, axis=-1) * jnp.linalg.norm(d), _EPS)) / 0.1
    assert out3.shape == (4, 5)
    assert jnp.allclose(out3, ref3, atol=1e-4, rtol=1e-4)

    print("KERNEL_OK")
</pallas_src>

<mosaic_0001>
module attributes {stable_mosaic.version = 11 : i64} {
  func.func @_inv_norm_kernel(%arg0: i32, %arg1: memref<8x32xf32, #tpu.memory_space<vmem>>, %arg2: memref<8x1xf32, #tpu.memory_space<vmem>>) attributes {dimension_semantics = [#tpu.dimension_semantics<parallel>], iteration_bounds = array<i64: 1>, scalar_prefetch = 0 : i64, scratch_operands = 0 : i64, tpu.core_type = #tpu.core_type<tc>, window_params = [{transform_indices = @transform_0, window_bounds = array<i64: 8, 32>}, {transform_indices = @transform_1, window_bounds = array<i64: 8, 1>}]} {
    %c0 = arith.constant 0 : index
    %c0_0 = arith.constant 0 : index
    %0 = vector.load %arg1[%c0, %c0_0] : memref<8x32xf32, #tpu.memory_space<vmem>>, vector<8x32xf32>
    %1 = arith.mulf %0, %0 : vector<8x32xf32>
    %cst = arith.constant dense<0.000000e+00> : vector<8xf32>
    %2 = vector.multi_reduction <add>, %1, %cst [1] : vector<8x32xf32> to vector<8xf32>
    %3 = vector.shape_cast %2 : vector<8xf32> to vector<8x1xf32>
    %cst_1 = arith.constant 1.000000e-16 : f32
    %4 = vector.broadcast %cst_1 : f32 to vector<8x1xf32>
    %5 = arith.maximumf %3, %4 : vector<8x1xf32>
    %6 = math.rsqrt %5 : vector<8x1xf32>
    %cst_2 = arith.constant 2.000000e+01 : f32
    %7 = vector.broadcast %cst_2 : f32 to vector<8x1xf32>
    %8 = arith.mulf %6, %7 : vector<8x1xf32>
    %c0_3 = arith.constant 0 : index
    %c0_4 = arith.constant 0 : index
    %9 = vector.load %arg2[%c0_3, %c0_4] : memref<8x1xf32, #tpu.memory_space<vmem>>, vector<8x1xf32>
    tpu.vector_store %arg2[%c0_3, %c0_4], %8 {strides = array<i32>} : memref<8x1xf32, #tpu.memory_space<vmem>>, vector<8x1xf32>,
    return
  }
  func.func @transform_0(%arg0: i32) -> (i32, i32) {
    %c0_i32 = arith.constant 0 : i32
    %c0_i32_0 = arith.constant 0 : i32
    return %arg0, %c0_i32 : i32, i32
  }
  func.func @transform_1(%arg0: i32) -> (i32, i32) {
    %c0_i32 = arith.constant 0 : i32
    %c0_i32_0 = arith.constant 0 : i32
    return %arg0, %c0_i32 : i32, i32
  }
}

</mosaic_0001>

<bundles_post_ra>
// kernel: tpu_custom_call.1
= control target key start
LH: loop header
LB: loop body
LE: loop exit
PB: predicated region body
PF: predicated region fallthrough
CT: control target
= control target key end

     0   :  { %6 = vsyncpa [#allocation3], 0  ;;  %s63_s6 = smov [#allocation2]   ;;  %s89_s0 = inlined_call_operand.hbm [shape: f32[8,32], index: 0, kind: input, shape index: {}]   ;;  %s90_s1 = inlined_call_operand.vmem [shape: f32[8,1], index: 1, kind: output, shape index: {}]  }
   0x1   :  { %s13_s7 = sshll.u32 %s63_s6, 4  ;;  %s39_s10 = scalar_lea.hbm %s89_s0, 128  ;;  %s14_s7 = int_to_ptr.vmem [resolvable:$true] %s13_s7 }
   0x2   :  { %p40_p0 = scmp.ne.s32.totalorder %s89_s0, %s39_s10  ;;  %p43_p1 = scmp.lt.u32.totalorder %s39_s10, %s89_s0 }
   0x4   :  { %p45_p2 = pnand %p43_p1, %p40_p0 }
   0x6   :  { %48 = shalt.err (!%p45_p2)
}
   0x7   :  { %s49_s15 = scalar_lea.vmem %s14_s7, 128  ;;  %p54_p4 = scmp.lt.s32.totalorder %s14_s7, %s14_s7 }
   0x8   :  { %p50_p3 = scmp.ne.s32.totalorder %s14_s7, %s49_s15  ;;  %p55_p5 = scmp.lt.s32.totalorder %s49_s15, %s49_s15 }
   0xa   :  { %p56_p6 = por %p55_p5, %p54_p4 }
   0xc   :  { %p57_p7 = pnand %p56_p6, %p50_p3 }
   0xe   :  { %60 = shalt.err (!%p57_p7)
}
   0xf   :  { %16 = dma.hbm_to_vmem [thread:$0]  %s89_s0, 128, %s14_s7, [#allocation3]  }
  0x10   :  { %61 = dma.done.wait [#allocation3], 128  }
  0x11   :  { %62 = vsyncadd [#allocation3], 4294967168  ;;  %v20_v0 = vld [vmem:[#allocation2] sm:$0xff]  ;;  %vm22_vm0 = vcmask 261120   ;;  %vm29_vm1 = vcmask 7168  }
  0x12   :  { %v21_v1 = vmul.f32 %v20_v0, %v20_v0 }
  0x14   :  { %v23_v2 = vsel %vm22_vm0, %v21_v1, 0.0 }
  0x15   :  { %24 = vadd.xlane.f32.xlu0 %v23_v2 }
  0xa2   :  { %v25_v3 = vpop.xlane.xlu0 %24 }
  0xa3   :  { %v26_v4 = vmax.f32 %v25_v3, 1e-16 }
  0xa5   :  { %37 = vrsqrt.f32 %v26_v4 }
  0xaf   :  { %v38_v5 = vpop.eup %37 }
  0xb0   :  { %v28_v6 = vmul.f32 20.0, %v38_v5 }
  0xb2   :  { %30 = vst.msk [vmem:[%s90_s1] sm:$0xff] %vm29_vm1, %v28_v6 }
  0xb3   :  { %35 = vsyncpa [#allocation3], 1 }

</bundles_post_ra>
